<compile_context>
chip_gen: v7x
topology: tpu7x:2x2x1
jax: 0.10.0
libtpu: 0.0.40
codegen_flags: <defaults>
</compile_context>

<pallas_src>
import numpy as np
import jax
import jax.numpy as jnp
from jax.experimental import pallas as pl
from jax.experimental.pallas import tpu as pltpu


# ---------- deterministic parameter construction (mirrors the PyTorch __init__) ----------

def kbd_window_np(win_len, filt_len, alpha=4):
    window = np.cumsum(np.kaiser(int(win_len / 2) + 1, np.pi * alpha))
    window = np.sqrt(window[:-1] / window[-1])
    pad = (filt_len - win_len) // 2 if filt_len > win_len else 0
    window = np.concatenate([window, window[::-1]])
    window = np.pad(window, (int(np.ceil(pad)), int(np.floor(pad))), mode="constant")
    return window.astype(np.float64)                        # (filt_len,)


def mdct_basis_np(N):
    n0 = (N // 2 + 1) / 2
    idx = np.arange(0, N, 1).reshape(N, 1)
    kn = np.multiply(idx + n0, (idx[: N // 2, :] + 0.5).T)  # (N, N//2)
    basis = np.cos(2 * np.pi / N * kn)
    return basis.T.astype(np.float64)                       # (N//2, N)


# ------------------------------ Pallas kernel (hot path) ------------------------------
# cur:  (rt, hop)  hop-chunks p_j .. p_{j+rt-1} of the zero-padded audio
# halo: (8, hop)   the next 8 chunks (only the first 2 are consumed)
# out row r = p_{j+r} @ WA + p_{j+r+1} @ WB + p_{j+r+2} @ WC      (f32 accumulate)

def _mdct_fused_kernel(cur_ref, halo_ref, wa_ref, wb_ref, wc_ref, out_ref):
    rt = out_ref.shape[0]
    cur = cur_ref[...]                                      # (rt, hop)
    ext = jnp.concatenate([cur, halo_ref[...]], axis=0)     # (rt + 8, hop)
    acc = jnp.dot(cur, wa_ref[...], preferred_element_type=jnp.float32)
    acc = acc + jnp.dot(ext[1:rt + 1], wb_ref[...], preferred_element_type=jnp.float32)
    acc = acc + jnp.dot(ext[2:rt + 2], wc_ref[...], preferred_element_type=jnp.float32)
    out_ref[...] = acc.astype(out_ref.dtype)


# ---------------------------------- tiling helpers ----------------------------------

def _cdiv(a, b):
    return -(-a // b)


def _round_up(x, m):
    return ((x + m - 1) // m) * m


def _device_kind():
    try:
        return jax.devices()[0].device_kind.lower()
    except Exception:
        return ""


def _tpu_memory_plan():
    """(vmem_limit_bytes, num_tensorcores_per_chip) - generation aware, safe fallbacks."""
    vmem_cap = 64 * 1024 * 1024                       # conservative default
    try:
        vmem_cap = int(pltpu.get_tpu_info().vmem_capacity_bytes)
    except Exception:
        pass
    kind = _device_kind()
    num_cores = 2 if "7" in kind else 1               # v7x-class chips: 2 TensorCores / chip
    # ~96 MiB on 128-MiB parts (v5e/v6e), ~48 MiB on 64-MiB v7x.
    vmem_limit = max(32 * 1024 * 1024, min(int(0.75 * vmem_cap), 112 * 1024 * 1024))
    return vmem_limit, num_cores


def _pick_row_tile(out_chunks, batch, hop, in_itemsize, out_itemsize,
                   vmem_limit, num_cores, target=2048):
    """Row tile (in hop-chunks): multiple of 8, as large as the VMEM budget allows."""
    budget = max(vmem_limit - 8 * 1024 * 1024, 16 * 1024 * 1024)   # headroom for compiler

    def usage(rt):
        in_tile = rt * hop * in_itemsize
        out_tile = rt * hop * out_itemsize
        halo_tile = 8 * hop * in_itemsize
        pipeline = 2 * (in_tile + out_tile + halo_tile)    # double-buffered pipeline blocks
        weights = 2 * 3 * hop * hop * in_itemsize          # WA/WB/WC (worst case 2 buffers each)
        scratch = 3 * in_tile + rt * hop * 4               # in-kernel shifted copies + f32 acc
        return pipeline + weights + scratch

    rt = min(target, _round_up(max(out_chunks, 8), 8))
    while rt > 8 and usage(rt) > budget:
        rt = max(8, _round_up(rt // 2, 8))
    if num_cores > 1:
        # v7x only: keep >= 2 grid steps per TensorCore so the "parallel" split has work.
        while rt > 8 and batch * _cdiv(out_chunks, rt) < 2 * num_cores:
            rt = max(8, _round_up(rt // 2, 8))
    return rt


# --------------------------------- pallas_call builder ---------------------------------

def mdct_fused_ola(chunks, wa, wb, wc, out_chunks, row_tile, out_dtype, vmem_limit):
    """chunks: (B, c_pad, hop) padded audio chunks -> (B, out_chunks, hop) reconstruction."""
    bb, c_pad, hop = chunks.shape
    rt = row_tile
    tiles = _cdiv(out_chunks, rt)
    assert rt % 8 == 0 and c_pad >= tiles * rt + 8          # all input/halo DMAs in bounds
    halo_blk = rt // 8                                      # halo offset in 8-chunk blocks

    in_itemsize = jnp.dtype(chunks.dtype).itemsize
    out_itemsize = jnp.dtype(out_dtype).itemsize
    cost = pl.CostEstimate(
        flops=int(2 * 3 * hop * hop * bb * tiles * rt),
        bytes_accessed=int((bb * c_pad * hop + bb * tiles * 8 * hop + 3 * hop * hop)
                           * in_itemsize + bb * out_chunks * hop * out_itemsize),
        transcendentals=0,
    )

    return pl.pallas_call(
        _mdct_fused_kernel,
        out_shape=jax.ShapeDtypeStruct((bb, out_chunks, hop), out_dtype),
        grid=(bb, tiles),
        in_specs=[
            pl.BlockSpec((None, rt, hop), lambda b, i: (b, i, 0)),                 # chunk tile
            pl.BlockSpec((None, 8, hop), lambda b, i: (b, (i + 1) * halo_blk, 0)),  # 8-chunk halo
            pl.BlockSpec((hop, hop), lambda b, i: (0, 0)),                         # WA (resident)
            pl.BlockSpec((hop, hop), lambda b, i: (0, 0)),                         # WB (resident)
            pl.BlockSpec((hop, hop), lambda b, i: (0, 0)),                         # WC (resident)
        ],
        out_specs=pl.BlockSpec((None, rt, hop), lambda b, i: (b, i, 0)),
        compiler_params=pltpu.CompilerParams(
            dimension_semantics=("parallel", "parallel"),
            vmem_limit_bytes=int(vmem_limit),
        ),
        cost_estimate=cost,
    )(chunks, chunks, wa, wb, wc)


# --------------------------------- module wrapper ----------------------------------

class MDCTPallas:
    """MDCT -> iMDCT roundtrip (forward pass of the PyTorch MDCT module), fully fused."""

    def __init__(self, filter_length=1024, window_length=None,
                 compute_dtype=None, out_dtype=jnp.float32):
        assert filter_length % 2 == 0
        self.filter_length = filter_length
        self.hop_length = filter_length // 2
        self.window_length = window_length if window_length else filter_length
        self.pad_amount = filter_length // 2
        assert filter_length >= self.window_length

        if compute_dtype is None:
            # v5e has no fast f32 MXU path -> default its compute dtype to bf16 (f32 accum).
            kind = _device_kind()
            compute_dtype = jnp.bfloat16 if ("v5 lite" in kind or "v5e" in kind) else jnp.float32
        self.compute_dtype = compute_dtype
        self.out_dtype = out_dtype

        window = kbd_window_np(self.window_length, filter_length, alpha=4)   # (N,)
        basis = mdct_basis_np(filter_length)                                 # (N//2, N)
        fb = basis * window[None, :]                                         # forward basis, f64
        self.forward_basis = jnp.asarray(fb.astype(np.float32))              # reference path only

        # Fused roundtrip matrix G = (4/N) * fb.T @ fb; only three hop x hop blocks of G
        # survive the 50% overlap-add:  y_j = p_j @ WA + p_{j+1} @ WB + p_{j+2} @ WC.
        hop = self.hop_length
        G = (fb.T @ fb) * (4.0 / filter_length)                              # (N, N), f64
        cast = lambda m: jnp.asarray(m.astype(np.float32)).astype(compute_dtype)
        self.WA = cast(G[:hop, hop:])
        self.WB = cast(G[:hop, :hop] + G[hop:, hop:])
        self.WC = cast(G[hop:, :hop])

        self._vmem_limit, self._num_cores = _tpu_memory_plan()

    def __call__(self, x):
        bb, S = x.shape
        hop = self.hop_length
        assert S >= hop, "need at least one hop of audio"
        T = S // hop + 1                     # frames produced by the strided conv (pad = hop)
        out_chunks = T - 1                   # reconstructed hop-chunks (== S // hop)

        rt = _pick_row_tile(out_chunks, bb, hop,
                            jnp.dtype(self.compute_dtype).itemsize,
                            jnp.dtype(self.out_dtype).itemsize,
                            self._vmem_limit, self._num_cores)
        tiles = _cdiv(out_chunks, rt)
        c_pad = tiles * rt + 8               # left pad + audio + right pad + halo/alignment
        pad_right = c_pad * hop - hop - S

        # Single fused pass: dtype cast + left hop-pad + right zero-pad (OLA boundary frames
        # plus tile/halo alignment).  The hop-chunk view afterwards is a free reshape.
        xp = jnp.pad(x.astype(self.compute_dtype), ((0, 0), (hop, pad_right)))
        chunks = xp.reshape(bb, c_pad, hop)

        y = mdct_fused_ola(chunks, self.WA, self.WB, self.WC,
                           out_chunks, rt, self.out_dtype, self._vmem_limit)
        return y.reshape(bb, out_chunks * hop)

    # pure-JAX reference of the ORIGINAL (unfused, gather + scatter-add) math, validation only
    def reference(self, x):
        B, S = x.shape
        hop, N = self.hop_length, self.filter_length
        padded = jnp.pad(x, ((0, 0), (self.pad_amount, self.pad_amount)))
        T = (padded.shape[1] - N) // hop + 1
        idx = jnp.arange(T)[:, None] * hop + jnp.arange(N)[None, :]
        frames = padded[:, idx]                                       # (B, T, N)
        mag = jnp.einsum("btn,kn->btk", frames, self.forward_basis)
        recon = jnp.einsum("btk,kn->btn", mag, self.forward_basis) * (4.0 / N)
        halves = recon.reshape(B, T, 2, hop)
        full = jnp.zeros((B, T + 1, hop), jnp.float32)
        full = full.at[:, :T].add(halves[:, :, 0])
        full = full.at[:, 1:].add(halves[:, :, 1])
        full = full.reshape(B, (T + 1) * hop)
        return full[:, hop:T * hop]


if __name__ == "__main__":
    filter_length = 16          # small power of 2, hop = 8
    B, S = 2, 64                # (num_batch, num_samples)

    key = jax.random.PRNGKey(0)
    x = jax.random.normal(key, (B, S), dtype=jnp.float32)

    # float32 path (tight check against the original unfused math)
    mdct = MDCTPallas(filter_length=filter_length, compute_dtype=jnp.float32)
    y = mdct(x)
    jax.block_until_ready(y)
    assert y.shape == (B, S), y.shape
    y_ref = mdct.reference(x)
    np.testing.assert_allclose(np.asarray(y), np.asarray(y_ref), rtol=1e-4, atol=1e-4)

    # partial last output tile (out_chunks not a multiple of the row tile)
    x2 = jax.random.normal(jax.random.PRNGKey(1), (B, 72), dtype=jnp.float32)
    y2 = mdct(x2)
    jax.block_until_ready(y2)
    np.testing.assert_allclose(np.asarray(y2), np.asarray(mdct.reference(x2)),
                               rtol=1e-4, atol=1e-4)

    # bfloat16 MXU path (v5e default / fast path on v6e,v7x): f32 accumulate, loose tolerance
    mdct_bf16 = MDCTPallas(filter_length=filter_length, compute_dtype=jnp.bfloat16)
    y16 = mdct_bf16(x)
    jax.block_until_ready(y16)
    assert y16.shape == (B, S), y16.shape
    np.testing.assert_allclose(np.asarray(y16), np.asarray(y_ref), rtol=1e-1, atol=1e-1)

    print("KERNEL_OK")
</pallas_src>

<mosaic_0001>
module attributes {stable_mosaic.version = 11 : i64} {
  func.func @_mdct_fused_kernel(%arg0: i32, %arg1: i32, %arg2: memref<1x8x8xf32, #tpu.memory_space<vmem>>, %arg3: memref<1x8x8xf32, #tpu.memory_space<vmem>>, %arg4: memref<8x8xf32, #tpu.memory_space<vmem>>, %arg5: memref<8x8xf32, #tpu.memory_space<vmem>>, %arg6: memref<8x8xf32, #tpu.memory_space<vmem>>, %arg7: memref<1x8x8xf32, #tpu.memory_space<vmem>>) attributes {dimension_semantics = [#tpu.dimension_semantics<parallel>, #tpu.dimension_semantics<parallel>], iteration_bounds = array<i64: 2, 1>, scalar_prefetch = 0 : i64, scratch_operands = 0 : i64, tpu.core_type = #tpu.core_type<tc>, window_params = [{transform_indices = @transform_0, window_bounds = array<i64: 1, 8, 8>}, {transform_indices = @transform_1, window_bounds = array<i64: 1, 8, 8>}, {pipeline_mode = #tpu.pipeline_mode<synchronous>, transform_indices = @transform_2, window_bounds = array<i64: 8, 8>}, {pipeline_mode = #tpu.pipeline_mode<synchronous>, transform_indices = @transform_3, window_bounds = array<i64: 8, 8>}, {pipeline_mode = #tpu.pipeline_mode<synchronous>, transform_indices = @transform_4, window_bounds = array<i64: 8, 8>}, {transform_indices = @transform_5, window_bounds = array<i64: 1, 8, 8>}]} {
    %c0 = arith.constant 0 : index
    %c0_0 = arith.constant 0 : index
    %c0_1 = arith.constant 0 : index
    %0 = vector.load %arg2[%c0, %c0_0, %c0_1] : memref<1x8x8xf32, #tpu.memory_space<vmem>>, vector<1x8x8xf32>
    %1 = vector.shape_cast %0 : vector<1x8x8xf32> to vector<8x8xf32>
    %c0_2 = arith.constant 0 : index
    %c0_3 = arith.constant 0 : index
    %c0_4 = arith.constant 0 : index
    %2 = vector.load %arg3[%c0_2, %c0_3, %c0_4] : memref<1x8x8xf32, #tpu.memory_space<vmem>>, vector<1x8x8xf32>
    %3 = vector.shape_cast %2 : vector<1x8x8xf32> to vector<8x8xf32>
    %4 = tpu.concatenate %1, %3 in 0 : vector<8x8xf32>, vector<8x8xf32> -> vector<16x8xf32>
    %c0_5 = arith.constant 0 : index
    %c0_6 = arith.constant 0 : index
    %5 = vector.load %arg4[%c0_5, %c0_6] : memref<8x8xf32, #tpu.memory_space<vmem>>, vector<8x8xf32>
    %cst = arith.constant dense<0.000000e+00> : vector<8x8xf32>
    %6 = tpu.matmul %1, %5, %cst {dimension_numbers = #tpu.dot_dimension_numbers<[1], [0], [0], [1], [0, 0, 1, 1], [], []>} : vector<8x8xf32>, vector<8x8xf32>, vector<8x8xf32> -> vector<8x8xf32>
    %7 = vector.extract_strided_slice %4 {offsets = [1, 0], sizes = [8, 8], strides = [1, 1]} : vector<16x8xf32> to vector<8x8xf32>
    %c0_7 = arith.constant 0 : index
    %c0_8 = arith.constant 0 : index
    %8 = vector.load %arg5[%c0_7, %c0_8] : memref<8x8xf32, #tpu.memory_space<vmem>>, vector<8x8xf32>
    %cst_9 = arith.constant dense<0.000000e+00> : vector<8x8xf32>
    %9 = tpu.matmul %7, %8, %cst_9 {dimension_numbers = #tpu.dot_dimension_numbers<[1], [0], [0], [1], [0, 0, 1, 1], [], []>} : vector<8x8xf32>, vector<8x8xf32>, vector<8x8xf32> -> vector<8x8xf32>
    %10 = arith.addf %6, %9 : vector<8x8xf32>
    %11 = vector.extract_strided_slice %4 {offsets = [2, 0], sizes = [8, 8], strides = [1, 1]} : vector<16x8xf32> to vector<8x8xf32>
    %c0_10 = arith.constant 0 : index
    %c0_11 = arith.constant 0 : index
    %12 = vector.load %arg6[%c0_10, %c0_11] : memref<8x8xf32, #tpu.memory_space<vmem>>, vector<8x8xf32>
    %cst_12 = arith.constant dense<0.000000e+00> : vector<8x8xf32>
    %13 = tpu.matmul %11, %12, %cst_12 {dimension_numbers = #tpu.dot_dimension_numbers<[1], [0], [0], [1], [0, 0, 1, 1], [], []>} : vector<8x8xf32>, vector<8x8xf32>, vector<8x8xf32> -> vector<8x8xf32>
    %14 = arith.addf %10, %13 : vector<8x8xf32>
    %c0_13 = arith.constant 0 : index
    %c0_14 = arith.constant 0 : index
    %c0_15 = arith.constant 0 : index
    %15 = vector.load %arg7[%c0_13, %c0_14, %c0_15] : memref<1x8x8xf32, #tpu.memory_space<vmem>>, vector<1x8x8xf32>
    %16 = vector.shape_cast %15 : vector<1x8x8xf32> to vector<8x8xf32>
    %17 = vector.shape_cast %14 : vector<8x8xf32> to vector<1x8x8xf32>
    tpu.vector_store %arg7[%c0_13, %c0_14, %c0_15], %17 {strides = array<i32>} : memref<1x8x8xf32, #tpu.memory_space<vmem>>, vector<1x8x8xf32>,
    return
  }
  func.func @transform_0(%arg0: i32, %arg1: i32) -> (i32, i32, i32) {
    %c0_i32 = arith.constant 0 : i32
    %c0_i32_0 = arith.constant 0 : i32
    return %arg0, %arg1, %c0_i32 : i32, i32, i32
  }
  func.func @transform_1(%arg0: i32, %arg1: i32) -> (i32, i32, i32) {
    %c1_i32 = arith.constant 1 : i32
    %0 = arith.addi %arg1, %c1_i32 : i32
    %c1_i32_0 = arith.constant 1 : i32
    %1 = arith.muli %0, %c1_i32_0 : i32
    %c0_i32 = arith.constant 0 : i32
    %c0_i32_1 = arith.constant 0 : i32
    return %arg0, %1, %c0_i32 : i32, i32, i32
  }
  func.func @transform_2(%arg0: i32, %arg1: i32) -> (i32, i32) {
    %c0_i32 = arith.constant 0 : i32
    %c0_i32_0 = arith.constant 0 : i32
    %c0_i32_1 = arith.constant 0 : i32
    return %c0_i32, %c0_i32_0 : i32, i32
  }
  func.func @transform_3(%arg0: i32, %arg1: i32) -> (i32, i32) {
    %c0_i32 = arith.constant 0 : i32
    %c0_i32_0 = arith.constant 0 : i32
    %c0_i32_1 = arith.constant 0 : i32
    return %c0_i32, %c0_i32_0 : i32, i32
  }
  func.func @transform_4(%arg0: i32, %arg1: i32) -> (i32, i32) {
    %c0_i32 = arith.constant 0 : i32
    %c0_i32_0 = arith.constant 0 : i32
    %c0_i32_1 = arith.constant 0 : i32
    return %c0_i32, %c0_i32_0 : i32, i32
  }
  func.func @transform_5(%arg0: i32, %arg1: i32) -> (i32, i32, i32) {
    %c0_i32 = arith.constant 0 : i32
    %c0_i32_0 = arith.constant 0 : i32
    return %arg0, %arg1, %c0_i32 : i32, i32, i32
  }
}

</mosaic_0001>

<bundles_post_ra>
// kernel: tpu_custom_call.1
= control target key start
LH: loop header
LB: loop body
LE: loop exit
PB: predicated region body
PF: predicated region fallthrough
CT: control target
= control target key end

     0   :  { %10 = vsyncpa [#allocation3], 0  ;;  %s973_s0 = inlined_call_operand.vmem [shape: f32[2,16,8], index: 0, kind: input, shape index: {}]   ;;  %s974_s1 = inlined_call_operand.vmem [shape: f32[2,16,8], index: 1, kind: input, shape index: {}]   ;;  %s975_s2 = inlined_call_operand.vmem [shape: f32[8,8], index: 2, kind: input, shape index: {}]   ;;  %s976_s3 = inlined_call_operand.vmem [shape: f32[8,8], index: 3, kind: input, shape index: {}]   ;;  %s977_s4 = inlined_call_operand.vmem [shape: f32[8,8], index: 4, kind: input, shape index: {}]   ;;  %s978_s5 = inlined_call_operand.hbm [shape: f32[2,8,8], index: 5, kind: output, shape index: {}]  }
   0x1   :  { %12 = vsyncpa [#allocation3 + $0x1], 0  ;;  %s842_s18 = smov 0   ;;  %s844_s19 = smov 0  }
   0x2   :  { %s846_s20 = smov 0   ;;  %s848_s21 = smov 0  }
   0x3   :  { %s850_s22 = smov 0   ;;  %s852_s23 = smov 0  }
   0x4 LB: > { %s627_s24 = sadd.s32 4294967295, %s807_s23   ;;  %s628_s25 = sadd.s32 4294967294, %s807_s23   ;;  %s807_s23 = sphi %s852_s23, %s18_s23   ;;  %s803_s22 = sphi %s850_s22, %s985_s22   ;;  %s799_s21 = sphi %s848_s21, %s984_s21   ;;  %s795_s20 = sphi %s846_s20, %s983_s20   ;;  %s791_s19 = sphi %s844_s19, %s982_s19   ;;  %s787_s18 = sphi %s842_s18, %s981_s18  }
   0x5   : > { %s30_s26 = sadd.s32 1, %s803_s22  ;;  %s160_s27 = sadd.s32 1, %s795_s20 }
   0x6   : > { %p32_p0 = scmp.ge.s32.totalorder %s30_s26, 2  ;;  %p170_p1 = scmp.ne.s32.totalorder %s795_s20, %s791_s19 }
   0x7   : > { %p171_p2 = scmp.eq.s32.totalorder %s627_s24, 1  ;;  %p176_p3 = scmp.ne.s32.totalorder %s791_s19, %s787_s18 }
   0x8   : > { %s987_s26 = smov (%p32_p0, %s30_s26), 0  ;;  %p177_p5 = scmp.eq.s32.totalorder %s628_s25, 1 }
   0x9   : > { %p882_p4 = por %p171_p2, %p170_p1  ;;  %s155_s29 = ssub.s32 %s803_s22, %s987_s26 }
   0xa   : > { %p631_p6 = scmp.ge.s32.totalorder %s807_s23, 1  ;;  %p158_p7 = scmp.eq.s32.totalorder %s155_s29, 0 }
   0xb   : > { %p889_p8 = por %p177_p5, %p176_p3  ;;  %p228_p9 = scmp.lt.s32.totalorder %s807_s23, 3 }
   0xc   : > { %s895_s6 = scalar_select %p158_p7, %s795_s20, %s160_s27  }
   0xd   : > { %p229_p10 = pnand %p631_p6, %p228_p9 }
   0xe   : > { %v288_v0 = vld [vmem:[%s975_s2] sm:$0xff] (!%p229_p10)  ;;  %p268_p11 = scmp.lt.s32.totalorder (!%p229_p10), %s799_s21, 1  ;;  %v809_v1 = vmov (!%p229_p10), 0.0   ;;  %vm810_vm0 = vmmov (!%p229_p10), 0   ;;  %vm296_vm1 = vcmask (!%p229_p10), 64512   ;;  %vm292_vm2 = vcmask (!%p229_p10), 1046528  }
   0xf   : > { %232 = sbr.rel (%p229_p10) target bundleno = 263 (0x107), region = 40  ;;  %659 = vmatprep.subr.mxu0 (!%p229_p10), %v809_v1  ;;  %661 = vmatprep.mubr.msk.f32.mxu0 (!%p229_p10), %vm810_vm0, %v809_v1  ;;  %v289_v2 = vld [vmem:[%s976_s3] sm:$0xff] (!%p229_p10)  ;;  %vm442_vm3 = vcmask (!%p229_p10), 1045504   ;;  %s265_s7 = sand.u32 (!%p229_p10), 1, %s791_s19  }
  0x10   : > { %660 = vmatpush3.msra.mxu0 (!%p229_p10), %v288_v0  ;;  %654 = vmatprep.subr.mxu1 (!%p229_p10), %v809_v1  ;;  %v441_v3 = vld [vmem:[%s977_s4] sm:$0xff] (!%p229_p10)  ;;  %s632_s8 = sshll.u32 (!%p229_p10), %s265_s7, 3  ;;  %s641_s9 = sshll.u32 (!%p229_p10), %s799_s21, 7 }
  0x11   : > { %664 = vmatprep.subr.mxu0 (!%p229_p10), %v809_v1  ;;  %655 = vmatpush3.msra.mxu1 (!%p229_p10), %v289_v2  ;;  %s267_s10 = scalar_lea.vmem (!%p229_p10), [#allocation2], %s632_s8  ;;  %s925_s14 = scalar_lea.hbm (!%p229_p10), %s978_s5, %s641_s9 }
  0x12   : > { %656 = vmatprep.mubr.msk.f32.mxu1 (!%p229_p10), %vm810_vm0, %v809_v1 }
  0x16   : > { %s269_s11 = scalar_select %p268_p11, %s799_s21, 1 }
  0x17   : > { %s811_s21 = smov [#allocation2]  }
  0x18   : > { %s644_s12 = sshll.u32 %s269_s11, 4  ;;  %s535_s11 = sshll.u32 %s267_s10, 4  ;;  %s927_s11 = int_to_ptr.vmem [resolvable:$true] %s535_s11 }
  0x19   : > { %s275_s15 = scalar_lea.vmem %s973_s0, %s644_s12  ;;  %s646_s16 = sadd.s32 8, %s644_s12 }
  0x1a   : > { %s284_s29 = scalar_lea.vmem %s974_s1, %s646_s16  ;;  %v286_v4 = vld [vmem:[%s275_s15] sm:$0xff]  ;;  %s521_s15 = scalar_lea.sflag [#allocation3], %s265_s7 }
  0x1b   : > { %v287_v5 = vld [vmem:[%s284_s29] sm:$0xff]  ;;  %v293_v6 = vrot.slane %v286_v4, 1  ;;  %662 = vmatmul.mubr.msk.f32.vlgmr.msra.gmra.mrb[0].mxu0 %vm296_vm1, %v286_v4  ;;  %v443_v8 = vrot.slane %v286_v4, 2  ;;  %s729_s16 = scalar_lea.vmem %s927_s11, 128  ;;  %s733_s17 = sshll.u32 %s811_s21, 4  ;;  %s734_s17 = int_to_ptr.vmem [resolvable:$false] %s733_s17 }
  0x1c   : > { %v294_v7 = vrot.slane %v287_v5, 1  ;;  %v444_v9 = vrot.slane %v287_v5, 2  ;;  %665 = vmatpush3.msra.mxu0 %v441_v3  ;;  %666 = vmatprep.mubr.msk.f32.mxu0 %vm810_vm0, %v809_v1  ;;  %p730_p12 = scmp.ne.s32.totalorder %s927_s11, %s729_s16  ;;  %s735_s24 = scalar_lea.vmem %s734_s17, 256 }
  0x1d   : > { %p736_p1 = scmp.lt.s32.totalorder %s927_s11, %s734_s17  ;;  %p737_p2 = scmp.lt.s32.totalorder %s735_s24, %s729_s16 }
  0x1e   : > { %v295_v10 = vsel %vm292_vm2, %v293_v6, %v294_v7  ;;  %v445_v11 = vsel %vm442_vm3, %v443_v8, %v444_v9  ;;  %p731_p13 = pnand %p730_p12, %p882_p4 }
  0x1f   : > { %657 = vmatmul.mubr.msk.f32.vlgmr.msra.gmra.mrb[0].mxu1 %vm296_vm1, %v295_v10  ;;  %p738_p3 = por %p737_p2, %p736_p1 }
  0x20   : > { %p732_p0 = pneg %p731_p13 }
  0x22   : > { %p739_p5 = pnand %p738_p3, %p732_p0 }
  0x23   : > { %667 = vmatmul.mubr.msk.f32.vlgmr.msra.gmra.mrb[0].mxu0 %vm296_vm1, %v445_v11 }
  0xf2   : > { %v365_v12 = vpop.f32.mrb[0].mxu1 }
  0xf3   : > { %v658_v13 = vpop.f32.mrb[1].mxu1 }
  0xf6   : > { %v514_v14 = vpop.f32.mrb[0].mxu0 }
  0xf7   : > { %v669_v15 = vadd.f32 %v514_v14, %v365_v12  ;;  %v668_v16 = vpop.f32.mrb[1].mxu0 }
  0xf9   : > { %519 = vst.msk [vmem:[%s267_s10] sm:$0xff] %vm296_vm1, %v669_v15 }
  0xfa   : > { %742 = shalt.err (!%p739_p5)
}
  0xfb   : > { %s743_s25 = scalar_lea.hbm %s925_s14, 128  ;;  %s747_s7 = scalar_lea.hbm %s978_s5, 256 }
  0xfc   : > { %p744_p6 = scmp.ne.s32.totalorder %s925_s14, %s743_s25  ;;  %p748_p10 = scmp.lt.u32.totalorder %s925_s14, %s978_s5 }
  0xfd   : > { %p749_p11 = scmp.lt.u32.totalorder %s747_s7, %s743_s25  ;;  %p751_p13 = scmp.lt.u32.totalorder %s743_s25, %s925_s14 }
  0xfe   : > { %p745_p7 = pnand %p744_p6, %p882_p4 }
  0xff   : > { %p750_p12 = por %p749_p11, %p748_p10 }
 0x100   : > { %p746_p9 = pneg %p745_p7 }
 0x101   : > { %p752_p0 = por %p751_p13, %p750_p12 }
 0x103   : > { %p753_p1 = pnand %p752_p0, %p746_p9 }
 0x105   : > { %756 = shalt.err (!%p753_p1)
}
 0x106   : > { %672 = dma.vmem_to_hbm [thread:$0]  (%p882_p4), %s927_s11, 128, %s925_s14, %s521_s15  }
 0x107 PF: > { %p678_p2 = scmp.ge.s32.totalorder %s807_s23, 2  ;;  %s547_s10 = sand.u32 1, %s787_s18  }
 0x108   : > { %s548_s12 = scalar_lea.sflag [#allocation3], %s547_s10 }
 0x109   : > { %p675_p3 = pnand %p678_p2, %p889_p8 }
 0x10b   : > { %782 = dma.done.wait (!%p675_p3), %s548_s12, 128  }
 0x10c   : > { %784 = vsyncadd (!%p675_p3), %s548_s12, 4294967168  ;;  %s18_s23 = sadd.s32 1, %s807_s23   ;;  %s981_s18 = smov %s791_s19 }
 0x10d   : > { %p15_p5 = scmp.ge.s32.totalorder %s18_s23, 4   ;;  %s982_s19 = smov %s795_s20 }
 0x10e   : > { %s983_s20 = smov %s895_s6  ;;  %s984_s21 = smov %s803_s22 }
 0x10f   : > { %s985_s22 = smov %s987_s26  ;;  %17 = sbr.rel (!%p15_p5) target bundleno = 4 (0x4), region = 78 }
 0x116   :  { %553 = vsyncpa [#allocation3], 1 }
 0x117   :  { %555 = vsyncpa [#allocation3 + $0x1], 1 }

</bundles_post_ra>
